<compile_context>
chip_gen: v7x
topology: tpu7x:2x2x1
jax: 0.10.0
libtpu: 0.0.40
codegen_flags: <defaults>
</compile_context>

<pallas_src>
import jax
import jax.numpy as jnp
from jax.experimental import pallas as pl
from jax.experimental.pallas import tpu as pltpu

_MAX_TILE_B = 8192  # lane width per grid step (multiple of 128)


def _round_up(n, m):
    return ((n + m - 1) // m) * m


def _mlp_kernel(x_ref,            # (1, TB)    f32  batch tile, batch on lanes
                w1_ref, b1_ref,   # (21, 1)    f32  (last row: 0 / 1 -> ones row)
                w2_ref,           # (129, 21)  f32  [[W2^T, b2],[0, 1]]
                w3_ref,           # (20, 129)  f32  [W3^T, b3]
                w4_ref, b4_ref,   # (20, 1)    f32  / (1, 1) f32
                o_ref):           # (1, TB)    f32
    x = x_ref[...]                                            # (1, TB)

    # Layer 1: Linear(1, 20) + ReLU.  K=1 is degenerate on the MXU, so do a
    # VPU broadcast outer product.  Row 20 is the carried "ones" row
    # (relu(0*x + 1) == 1) that feeds the folded b2.
    h1 = jnp.maximum(w1_ref[...] * x + b1_ref[...], 0.0)      # (21, TB)

    # Layer 2: Linear(20, 128) + ReLU on the MXU, f32 in / f32 acc.
    # Bias b2 is folded into the contraction via the ones row; row 128 of the
    # result is again a carried "ones" row that feeds the folded b3.
    h2 = jnp.maximum(
        jnp.dot(w2_ref[...], h1, preferred_element_type=jnp.float32), 0.0)
    # (129, TB)

    # Layer 3: Linear(128, 20) + ReLU on the MXU, bias b3 folded into K.
    h3 = jnp.maximum(
        jnp.dot(w3_ref[...], h2, preferred_element_type=jnp.float32), 0.0)
    # (20, TB)

    # Layer 4: Linear(20, 1).  N=1 is degenerate on the MXU: VPU multiply +
    # XLU sublane reduce.  Output stays lane-dense: (1, TB).
    o_ref[...] = (jnp.sum(h3 * w4_ref[...], axis=0, keepdims=True)
                  + b4_ref[...])


def prepare_kernel_params(params):
    """One-time reformat of (in,out)-layout params into kernel layout.
    Kept OUT of the jitted forward path (perf review: hoist the ~8 tiny
    transpose/concat ops off the per-call critical path)."""
    f32 = jnp.float32
    w1 = params["w1"].astype(f32)   # (1, 20)
    b1 = params["b1"].astype(f32)   # (1, 20)
    w2 = params["w2"].astype(f32)   # (20, 128)
    b2 = params["b2"].astype(f32)   # (1, 128)
    w3 = params["w3"].astype(f32)   # (128, 20)
    b3 = params["b3"].astype(f32)   # (1, 20)
    w4 = params["w4"].astype(f32)   # (20, 1)
    b4 = params["b4"].astype(f32)   # (1, 1)

    # Layer 1 with an appended "ones" row (weight 0, bias 1 -> relu(1) == 1).
    w1c = jnp.concatenate([w1.T, jnp.zeros((1, 1), f32)], axis=0)   # (21, 1)
    b1c = jnp.concatenate([b1.T, jnp.ones((1, 1), f32)], axis=0)    # (21, 1)

    # Layer 2 augmented: [[W2^T, b2^T], [0, 1]] -> (129, 21).
    top = jnp.concatenate([w2.T, b2.T], axis=1)                     # (128, 21)
    bot = jnp.concatenate([jnp.zeros((1, 20), f32),
                           jnp.ones((1, 1), f32)], axis=1)          # (1, 21)
    w2c = jnp.concatenate([top, bot], axis=0)                       # (129, 21)

    # Layer 3 augmented: [W3^T, b3^T] -> (20, 129).
    w3c = jnp.concatenate([w3.T, b3.T], axis=1)                     # (20, 129)

    return {"w1": w1c, "b1": b1c, "w2": w2c, "w3": w3c,
            "w4": w4, "b4": b4.T}


@jax.jit
def homework1_net_relu_forward(x, kparams):
    """x: (B, 1) float32.  kparams: output of prepare_kernel_params.  -> (B, 1)."""
    B = x.shape[0]

    # Batch-on-lanes layout: transpose to (1, B) and pad the lane axis so each
    # tile is a multiple of 128 lanes (unmasked vector stores).  For B > 128
    # the tile is capped at ceil(B/2) so the grid has >= 2 "parallel" steps
    # (keeps both TensorCores busy on v7x); tiles grow up to 8192 lanes so
    # grid-step overhead and tiny DMAs don't dominate at large B.
    if B <= 128:
        tile_b = 128
    else:
        tile_b = min(_MAX_TILE_B, _round_up((B + 1) // 2, 128))
    b_pad = _round_up(B, tile_b)
    xt = jnp.pad(x.astype(jnp.float32).T, ((0, 0), (0, b_pad - B)))  # (1, b_pad)

    w1c, b1c = kparams["w1"], kparams["b1"]
    w2c, w3c = kparams["w2"], kparams["w3"]
    w4c, b4c = kparams["w4"], kparams["b4"]

    grid = (b_pad // tile_b,)

    # Batch tiles move along the grid; weights use constant index maps so they
    # stay resident in VMEM across batch tiles.
    batch_spec = pl.BlockSpec((1, tile_b), lambda i: (0, i))
    resident = lambda a: pl.BlockSpec(a.shape, lambda i: (0, 0))

    flops = 2 * b_pad * (21 + 21 * 129 + 129 * 20 + 20)
    weight_bytes = sum(int(a.size) * a.dtype.itemsize
                       for a in (w1c, b1c, w2c, w3c, w4c, b4c))
    cost = pl.CostEstimate(flops=flops, transcendentals=0,
                           bytes_accessed=8 * b_pad + weight_bytes)

    out = pl.pallas_call(
        _mlp_kernel,
        out_shape=jax.ShapeDtypeStruct((1, b_pad), jnp.float32),
        grid=grid,
        in_specs=[batch_spec,
                  resident(w1c), resident(b1c),
                  resident(w2c),
                  resident(w3c),
                  resident(w4c), resident(b4c)],
        out_specs=batch_spec,
        compiler_params=pltpu.CompilerParams(
            dimension_semantics=("parallel",),
            vmem_limit_bytes=32 * 1024 * 1024),
        cost_estimate=cost,
    )(xt, w1c, b1c, w2c, w3c, w4c, b4c)

    return out[:, :B].T                                # (B, 1)


def init_params(key):
    """Deterministic init mimicking torch.nn.Linear defaults:
    U(-1/sqrt(fan_in), 1/sqrt(fan_in)) for weight and bias.
    Stored as w: (in, out), b: (1, out)."""
    dims = [(1, 20), (20, 128), (128, 20), (20, 1)]
    params = {}
    keys = jax.random.split(key, 2 * len(dims))
    for i, (fan_in, fan_out) in enumerate(dims):
        bound = 1.0 / (fan_in ** 0.5)
        w = jax.random.uniform(keys[2 * i], (fan_in, fan_out),
                               minval=-bound, maxval=bound, dtype=jnp.float32)
        b = jax.random.uniform(keys[2 * i + 1], (1, fan_out),
                               minval=-bound, maxval=bound, dtype=jnp.float32)
        params[f"w{i + 1}"] = w
        params[f"b{i + 1}"] = b
    return params


def reference_forward_f32(x, params):
    """Plain full-f32 JAX reference (the torch module's math)."""
    h = jnp.maximum(x @ params["w1"] + params["b1"], 0.0)
    h = jnp.maximum(h @ params["w2"] + params["b2"], 0.0)
    h = jnp.maximum(h @ params["w3"] + params["b3"], 0.0)
    return h @ params["w4"] + params["b4"]


if __name__ == "__main__":
    key = jax.random.PRNGKey(0)
    pkey, xkey1, xkey2 = jax.random.split(key, 3)

    params = init_params(pkey)
    kparams = prepare_kernel_params(params)   # one-time, outside the jit path

    # Small batch of scalar inputs, shape (B, 1) like torch Linear(1, ...).
    x_small = jax.random.normal(xkey1, (8, 1), dtype=jnp.float32)
    y_small = jax.block_until_ready(homework1_net_relu_forward(x_small, kparams))
    y_ref_small = reference_forward_f32(x_small, params)
    assert y_small.shape == (8, 1)
    assert jnp.allclose(y_small, y_ref_small, atol=1e-5, rtol=1e-5)

    # Second size exercising padding + a multi-step "parallel" grid.
    x_big = jax.random.normal(xkey2, (300, 1), dtype=jnp.float32)
    y_big = jax.block_until_ready(homework1_net_relu_forward(x_big, kparams))
    y_ref_big = reference_forward_f32(x_big, params)
    assert y_big.shape == (300, 1)
    assert jnp.allclose(y_big, y_ref_big, atol=1e-5, rtol=1e-5)

    print("KERNEL_OK")
</pallas_src>

<mosaic_0001>
module attributes {stable_mosaic.version = 11 : i64} {
  func.func @_mlp_kernel(%arg0: i32, %arg1: memref<1x128xf32, #tpu.memory_space<vmem>>, %arg2: memref<21x1xf32, #tpu.memory_space<vmem>>, %arg3: memref<21x1xf32, #tpu.memory_space<vmem>>, %arg4: memref<129x21xf32, #tpu.memory_space<vmem>>, %arg5: memref<20x129xf32, #tpu.memory_space<vmem>>, %arg6: memref<20x1xf32, #tpu.memory_space<vmem>>, %arg7: memref<1x1xf32, #tpu.memory_space<vmem>>, %arg8: memref<1x128xf32, #tpu.memory_space<vmem>>) attributes {dimension_semantics = [#tpu.dimension_semantics<parallel>], iteration_bounds = array<i64: 1>, scalar_prefetch = 0 : i64, scratch_operands = 0 : i64, tpu.core_type = #tpu.core_type<tc>, window_params = [{transform_indices = @transform_0, window_bounds = array<i64: 1, 128>}, {pipeline_mode = #tpu.pipeline_mode<synchronous>, transform_indices = @transform_1, window_bounds = array<i64: 21, 1>}, {pipeline_mode = #tpu.pipeline_mode<synchronous>, transform_indices = @transform_2, window_bounds = array<i64: 21, 1>}, {pipeline_mode = #tpu.pipeline_mode<synchronous>, transform_indices = @transform_3, window_bounds = array<i64: 129, 21>}, {pipeline_mode = #tpu.pipeline_mode<synchronous>, transform_indices = @transform_4, window_bounds = array<i64: 20, 129>}, {pipeline_mode = #tpu.pipeline_mode<synchronous>, transform_indices = @transform_5, window_bounds = array<i64: 20, 1>}, {pipeline_mode = #tpu.pipeline_mode<synchronous>, transform_indices = @transform_6, window_bounds = array<i64: 1, 1>}, {transform_indices = @transform_7, window_bounds = array<i64: 1, 128>}]} {
    %c0 = arith.constant 0 : index
    %c0_0 = arith.constant 0 : index
    %0 = vector.load %arg1[%c0, %c0_0] : memref<1x128xf32, #tpu.memory_space<vmem>>, vector<1x128xf32>
    %c0_1 = arith.constant 0 : index
    %c0_2 = arith.constant 0 : index
    %1 = vector.load %arg2[%c0_1, %c0_2] : memref<21x1xf32, #tpu.memory_space<vmem>>, vector<21x1xf32>
    %2 = vector.broadcast %1 : vector<21x1xf32> to vector<21x128xf32>
    %3 = vector.broadcast %0 : vector<1x128xf32> to vector<21x128xf32>
    %4 = arith.mulf %2, %3 : vector<21x128xf32>
    %c0_3 = arith.constant 0 : index
    %c0_4 = arith.constant 0 : index
    %5 = vector.load %arg3[%c0_3, %c0_4] : memref<21x1xf32, #tpu.memory_space<vmem>>, vector<21x1xf32>
    %6 = vector.broadcast %5 : vector<21x1xf32> to vector<21x128xf32>
    %7 = arith.addf %4, %6 : vector<21x128xf32>
    %cst = arith.constant 0.000000e+00 : f32
    %8 = vector.broadcast %cst : f32 to vector<21x128xf32>
    %9 = arith.maximumf %7, %8 : vector<21x128xf32>
    %c0_5 = arith.constant 0 : index
    %c0_6 = arith.constant 0 : index
    %10 = vector.load %arg4[%c0_5, %c0_6] : memref<129x21xf32, #tpu.memory_space<vmem>>, vector<129x21xf32>
    %cst_7 = arith.constant dense<0.000000e+00> : vector<129x128xf32>
    %11 = tpu.matmul %10, %9, %cst_7 {dimension_numbers = #tpu.dot_dimension_numbers<[1], [0], [0], [1], [0, 0, 1, 1], [], []>} : vector<129x21xf32>, vector<21x128xf32>, vector<129x128xf32> -> vector<129x128xf32>
    %cst_8 = arith.constant 0.000000e+00 : f32
    %12 = vector.broadcast %cst_8 : f32 to vector<129x128xf32>
    %13 = arith.maximumf %11, %12 : vector<129x128xf32>
    %c0_9 = arith.constant 0 : index
    %c0_10 = arith.constant 0 : index
    %14 = vector.load %arg5[%c0_9, %c0_10] : memref<20x129xf32, #tpu.memory_space<vmem>>, vector<20x129xf32>
    %cst_11 = arith.constant dense<0.000000e+00> : vector<20x128xf32>
    %15 = tpu.matmul %14, %13, %cst_11 {dimension_numbers = #tpu.dot_dimension_numbers<[1], [0], [0], [1], [0, 0, 1, 1], [], []>} : vector<20x129xf32>, vector<129x128xf32>, vector<20x128xf32> -> vector<20x128xf32>
    %cst_12 = arith.constant 0.000000e+00 : f32
    %16 = vector.broadcast %cst_12 : f32 to vector<20x128xf32>
    %17 = arith.maximumf %15, %16 : vector<20x128xf32>
    %c0_13 = arith.constant 0 : index
    %c0_14 = arith.constant 0 : index
    %18 = vector.load %arg6[%c0_13, %c0_14] : memref<20x1xf32, #tpu.memory_space<vmem>>, vector<20x1xf32>
    %19 = vector.broadcast %18 : vector<20x1xf32> to vector<20x128xf32>
    %20 = arith.mulf %17, %19 : vector<20x128xf32>
    %cst_15 = arith.constant dense<0.000000e+00> : vector<128xf32>
    %21 = vector.multi_reduction <add>, %20, %cst_15 [0] : vector<20x128xf32> to vector<128xf32>
    %22 = vector.shape_cast %21 : vector<128xf32> to vector<1x128xf32>
    %c0_16 = arith.constant 0 : index
    %c0_17 = arith.constant 0 : index
    %23 = vector.load %arg7[%c0_16, %c0_17] : memref<1x1xf32, #tpu.memory_space<vmem>>, vector<1x1xf32>
    %24 = vector.broadcast %23 : vector<1x1xf32> to vector<1x128xf32>
    %25 = arith.addf %22, %24 : vector<1x128xf32>
    %c0_18 = arith.constant 0 : index
    %c0_19 = arith.constant 0 : index
    %26 = vector.load %arg8[%c0_18, %c0_19] : memref<1x128xf32, #tpu.memory_space<vmem>>, vector<1x128xf32>
    tpu.vector_store %arg8[%c0_18, %c0_19], %25 {strides = array<i32>} : memref<1x128xf32, #tpu.memory_space<vmem>>, vector<1x128xf32>,
    return
  }
  func.func @transform_0(%arg0: i32) -> (i32, i32) {
    %c0_i32 = arith.constant 0 : i32
    %c0_i32_0 = arith.constant 0 : i32
    return %c0_i32, %arg0 : i32, i32
  }
  func.func @transform_1(%arg0: i32) -> (i32, i32) {
    %c0_i32 = arith.constant 0 : i32
    %c0_i32_0 = arith.constant 0 : i32
    %c0_i32_1 = arith.constant 0 : i32
    return %c0_i32, %c0_i32_0 : i32, i32
  }
  func.func @transform_2(%arg0: i32) -> (i32, i32) {
    %c0_i32 = arith.constant 0 : i32
    %c0_i32_0 = arith.constant 0 : i32
    %c0_i32_1 = arith.constant 0 : i32
    return %c0_i32, %c0_i32_0 : i32, i32
  }
  func.func @transform_3(%arg0: i32) -> (i32, i32) {
    %c0_i32 = arith.constant 0 : i32
    %c0_i32_0 = arith.constant 0 : i32
    %c0_i32_1 = arith.constant 0 : i32
    return %c0_i32, %c0_i32_0 : i32, i32
  }
  func.func @transform_4(%arg0: i32) -> (i32, i32) {
    %c0_i32 = arith.constant 0 : i32
    %c0_i32_0 = arith.constant 0 : i32
    %c0_i32_1 = arith.constant 0 : i32
    return %c0_i32, %c0_i32_0 : i32, i32
  }
  func.func @transform_5(%arg0: i32) -> (i32, i32) {
    %c0_i32 = arith.constant 0 : i32
    %c0_i32_0 = arith.constant 0 : i32
    %c0_i32_1 = arith.constant 0 : i32
    return %c0_i32, %c0_i32_0 : i32, i32
  }
  func.func @transform_6(%arg0: i32) -> (i32, i32) {
    %c0_i32 = arith.constant 0 : i32
    %c0_i32_0 = arith.constant 0 : i32
    %c0_i32_1 = arith.constant 0 : i32
    return %c0_i32, %c0_i32_0 : i32, i32
  }
  func.func @transform_7(%arg0: i32) -> (i32, i32) {
    %c0_i32 = arith.constant 0 : i32
    %c0_i32_0 = arith.constant 0 : i32
    return %c0_i32, %arg0 : i32, i32
  }
}

</mosaic_0001>

<bundles_post_ra>
// kernel: homework1_net_relu_forward.1
= control target key start
LH: loop header
LB: loop body
LE: loop exit
PB: predicated region body
PF: predicated region fallthrough
CT: control target
= control target key end

     0   :  { %v603_v0 = vmov 0   ;;  %v604_v10 = vmov 0.0|0.0   ;;  %vm605_vm0 = vmmov 0   ;;  %v606_v13 = vmov 0.0   ;;  %s817_s2 = inlined_call_operand.vmem [shape: f32[21,1], index: 2, kind: input, shape index: {}]   ;;  %s818_s1 = inlined_call_operand.vmem [shape: f32[21,1], index: 1, kind: input, shape index: {}]   ;;  %s819_s6 = inlined_call_operand.<no memory space> [shape: f32[1,1], index: 6, kind: input, shape index: {}]   ;;  %s820_s5 = inlined_call_operand.vmem [shape: f32[20,1], index: 5, kind: input, shape index: {}]   ;;  %s821_s0 = inlined_call_operand.vmem [shape: f32[1,128], index: 0, kind: input, shape index: {}]   ;;  %s822_s3 = inlined_call_operand.vmem [shape: f32[129,21], index: 3, kind: input, shape index: {}]   ;;  %s823_s4 = inlined_call_operand.vmem [shape: f32[20,129], index: 4, kind: input, shape index: {}]   ;;  %s824_s7 = inlined_call_operand.vmem [shape: f32[1,128], index: 7, kind: output, shape index: {}]  }
   0x1   :  { %602 = vset.pattern.permute.xlu1 %v603_v0  ;;  %601 = vset.pattern.permute.xlu0 %v603_v0  ;;  %v56_v1 = vld [vmem:[%s817_s2] sm:$0xff]  ;;  %v12_v3 = vstv %s819_s6  ;;  %v57_v4 = vld [vmem:[%s817_s2 + $0x8] sm:$0xff]  ;;  %v58_v6 = vld [vmem:[%s817_s2 + $0x10] sm:$0x1f]  ;;  %vm149_vm1 = vcmask 1044480   ;;  %vm97_vm2 = vcmask 171008  }
   0x2   :  { %v29_v2 = vld [vmem:[%s818_s1] sm:$0xff]  ;;  %61 = vperm.xlu1 %602, %v56_v1   ;;  %13 = vst [vmem:[#allocation2] sm:$0x1] %v12_v3  ;;  %v30_v5 = vld [vmem:[%s818_s1 + $0x8] sm:$0xff]  ;;  %v31_v7 = vld [vmem:[%s818_s1 + $0x10] sm:$0x1f]  ;;  %570 = vmatprep.subr.bf16.mxu0 %v604_v10 }
   0x3   :  { %34 = vperm.xlu0 %601, %v29_v2   ;;  %v424_v8 = vld [vmem:[%s820_s5 + $0x8] sm:$0xff]  ;;  %v423_v9 = vld [vmem:[%s820_s5] sm:$0xff]  ;;  %573 = vmatprep.subr.bf16.mxu1 %v604_v10  ;;  %v425_v12 = vld [vmem:[%s820_s5 + $0x10] sm:$0xf]  ;;  %vm326_vm3 = vcmask 7168   ;;  %vm336_vm4 = vcmask 1040384  }
   0x4   :  { %519 = vmatprep.mubr.msk.f32.mxu0 %vm605_vm0, %v606_v13  ;;  %v470_v14 = vld [vmem:[%s821_s0] ss:$0 sm:$0xff]  ;;  %v81_v32 = vld [vmem:[%s822_s3 + $0x8] sm:$0xff]  ;;  %v82_v33 = vld [vmem:[%s822_s3 + $0x10] sm:$0xff]  ;;  %vm445_vm5 = vcmask 1043456  }
   0x5   :  { %v80_v31 = vld [vmem:[%s822_s3] sm:$0xff]  ;;  %v83_v34 = vld [vmem:[%s822_s3 + $0x18] sm:$0xff]  ;;  %v85_v36 = vld [vmem:[%s822_s3 + $0x28] sm:$0xff] }
   0x6   :  { %66 = vperm.xlu1 %602, %v57_v4   ;;  %v84_v35 = vld [vmem:[%s822_s3 + $0x20] sm:$0xff]  ;;  %v86_v37 = vld [vmem:[%s822_s3 + $0x30] sm:$0xff]  ;;  %v87_v38 = vld [vmem:[%s822_s3 + $0x38] sm:$0xff] }
   0x7   :  { %39 = vperm.xlu0 %601, %v30_v5   ;;  %v88_v39 = vld [vmem:[%s822_s3 + $0x40] sm:$0xff]  ;;  %v89_v40 = vld [vmem:[%s822_s3 + $0x48] sm:$0xff]  ;;  %v90_v41 = vld [vmem:[%s822_s3 + $0x50] sm:$0xff] }
   0x8   :  { %v91_v42 = vld [vmem:[%s822_s3 + $0x58] sm:$0xff]  ;;  %v92_v43 = vld [vmem:[%s822_s3 + $0x60] sm:$0xff]  ;;  %v93_v44 = vld [vmem:[%s822_s3 + $0x68] sm:$0xff] }
   0x9   :  { %v454_v11 = vld [vmem:[#allocation2] sm:$0x1]  ;;  %v94_v45 = vld [vmem:[%s822_s3 + $0x70] sm:$0xff]  ;;  %v95_v46 = vld [vmem:[%s822_s3 + $0x78] sm:$0xff] }
   0xa   :  { %71 = vperm.xlu1 %602, %v58_v6   ;;  %v96_v47 = vld [vmem:[%s822_s3 + $0x80] sm:$0x1]  ;;  %v321_v48 = vld [vmem:[%s823_s4 + $0x8] sm:$0xff] }
   0xb   :  { %44 = vperm.xlu0 %601, %v31_v7   ;;  %490 = vmatprep.mubr.msk.f32.mxu1 %vm326_vm3, %v321_v48  ;;  %v324_v48 = vld [vmem:[%s823_s4 + $0x20] sm:$0xf] }
   0xe   :  { %433 = vperm.xlu1 %602, %v424_v8  }
   0xf   :  { %428 = vperm.xlu0 %601, %v423_v9  }
  0x12   :  { %457 = vperm.xlu1 %602, %v454_v11  }
  0x13   :  { %438 = vperm.xlu0 %601, %v425_v12  }
  0x81   :  { %v62_v15 = vpop.permute.xlu1 %61 }
  0x82   :  { %v35_v16 = vpop.permute.xlu0 %34 }
  0x83   :  { %v53_v17 = vmul.f32 %v470_v14, %v35_v16 }
  0x85   :  { %v67_v18 = vpop.permute.xlu1 %66  ;;  %v74_v20 = vadd.f32 %v62_v15, %v53_v17 }
  0x86   :  { %v40_v19 = vpop.permute.xlu0 %39 }
  0x87   :  { %v54_v21 = vmul.f32 %v470_v14, %v40_v19  ;;  %v77_v24 = vmax.f32 %v74_v20, 0.0 }
  0x89   :  { %v75_v22 = vadd.f32 %v67_v18, %v54_v21  ;;  %v72_v27 = vpop.permute.xlu1 %71 }
  0x8a   :  { %v45_v23 = vpop.permute.xlu0 %44 }
  0x8b   :  { %v78_v25 = vmax.f32 %v75_v22, 0.0  ;;  %v55_v26 = vmul.f32 %v470_v14, %v45_v23 }
  0x8d   :  { %v76_v28 = vadd.f32 %v72_v27, %v55_v26  ;;  %v571_v29 = vpack.c.bf16 %v78_v25, %v77_v24 }
  0x8f   :  { %572 = vmatpush3.bf16.msra.mxu0 %v571_v29  ;;  %v79_v30 = vmax.f32 %v76_v28, 0.0 }
  0x90   :  { %517 = vmatprep.subr.mxu0 %v606_v13 }
  0x93   :  { %518 = vmatpush3.msk.msra.mxu0 %vm149_vm1, %v79_v30 }
  0x94   :  { %520 = vmatmul.mubr.msk.f32.vlgmr.msra.gmra.mrb[0].mxu0 %vm97_vm2, %v80_v31 }
  0x95   :  { %522 = vmatprep.mubr.msk.f32.mxu0 %vm605_vm0, %v606_v13 }
  0x98   :  { %523 = vmatmul.mubr.msk.f32.gmra.mrb[2].mxu0 %vm97_vm2, %v81_v32 }
  0x99   :  { %525 = vmatprep.mubr.msk.f32.mxu0 %vm605_vm0, %v606_v13 }
  0x9c   :  { %526 = vmatmul.mubr.msk.f32.gmra.mrb[4].mxu0 %vm97_vm2, %v82_v33 }
  0x9d   :  { %528 = vmatprep.mubr.msk.f32.mxu0 %vm605_vm0, %v606_v13 }
  0xa0   :  { %529 = vmatmul.mubr.msk.f32.gmra.mrb[6].mxu0 %vm97_vm2, %v83_v34 }
  0xa1   :  { %531 = vmatprep.mubr.msk.f32.mxu0 %vm605_vm0, %v606_v13 }
  0xa4   :  { %532 = vmatmul.mubr.msk.f32.gmra.mrb[8].mxu0 %vm97_vm2, %v84_v35 }
  0xa5   :  { %534 = vmatprep.mubr.msk.f32.mxu0 %vm605_vm0, %v606_v13 }
  0xa8   :  { %535 = vmatmul.mubr.msk.f32.gmra.mrb[10].mxu0 %vm97_vm2, %v85_v36 }
  0xa9   :  { %537 = vmatprep.mubr.msk.f32.mxu0 %vm605_vm0, %v606_v13 }
  0xac   :  { %538 = vmatmul.mubr.msk.f32.gmra.mrb[12].mxu0 %vm97_vm2, %v86_v37 }
  0xad   :  { %540 = vmatprep.mubr.msk.f32.mxu0 %vm605_vm0, %v606_v13 }
  0xb0   :  { %541 = vmatmul.mubr.msk.f32.gmra.mrb[14].mxu0 %vm97_vm2, %v87_v38 }
  0xb1   :  { %543 = vmatprep.mubr.msk.f32.mxu0 %vm605_vm0, %v606_v13 }
  0xb4   :  { %544 = vmatmul.mubr.msk.f32.gmra.mrb[16].mxu0 %vm97_vm2, %v88_v39 }
  0xb5   :  { %546 = vmatprep.mubr.msk.f32.mxu0 %vm605_vm0, %v606_v13 }
  0xb8   :  { %547 = vmatmul.mubr.msk.f32.gmra.mrb[18].mxu0 %vm97_vm2, %v89_v40 }
  0xb9   :  { %549 = vmatprep.mubr.msk.f32.mxu0 %vm605_vm0, %v606_v13 }
  0xbc   :  { %550 = vmatmul.mubr.msk.f32.gmra.mrb[20].mxu0 %vm97_vm2, %v90_v41 }
  0xbd   :  { %552 = vmatprep.mubr.msk.f32.mxu0 %vm605_vm0, %v606_v13 }
  0xc0   :  { %553 = vmatmul.mubr.msk.f32.gmra.mrb[22].mxu0 %vm97_vm2, %v91_v42 }
  0xc1   :  { %555 = vmatprep.mubr.msk.f32.mxu0 %vm605_vm0, %v606_v13 }
  0xc4   :  { %556 = vmatmul.mubr.msk.f32.gmra.mrb[24].mxu0 %vm97_vm2, %v92_v43 }
  0xc5   :  { %558 = vmatprep.mubr.msk.f32.mxu0 %vm605_vm0, %v606_v13 }
  0xc8   :  { %559 = vmatmul.mubr.msk.f32.gmra.mrb[26].mxu0 %vm97_vm2, %v93_v44 }
  0xc9   :  { %561 = vmatprep.mubr.msk.f32.mxu0 %vm605_vm0, %v606_v13 }
  0xcc   :  { %562 = vmatmul.mubr.msk.f32.gmra.mrb[28].mxu0 %vm97_vm2, %v94_v45 }
  0xcd   :  { %564 = vmatprep.mubr.msk.f32.mxu0 %vm605_vm0, %v606_v13 }
  0xd0   :  { %565 = vmatmul.mubr.msk.f32.gmra.mrb[30].mxu0 %vm97_vm2, %v95_v46  ;;  %v320_v46 = vld [vmem:[%s823_s4] sm:$0xff] }
  0xd1   :  { %567 = vmatprep.mubr.msk.f32.mxu0 %vm605_vm0, %v606_v13 }
  0xd4   :  { %568 = vmatmul.mubr.msk.f32.gmra.mrb[32].mxu0 %vm97_vm2, %v96_v47  ;;  %v322_v47 = vld [vmem:[%s823_s4 + $0x10] sm:$0xff] }
 0x167   :  { %v219_v49 = vpop.f32.mrb[0].mxu0 }
 0x168   :  { %v521_v50 = vpop.f32.mrb[1].mxu0  ;;  %v303_v52 = vmax.f32 %v219_v49, 0.0 }
 0x16b   :  { %v224_v51 = vpop.f32.mrb[2].mxu0 }
 0x16c   :  { %v304_v53 = vmax.f32 %v224_v51, 0.0  ;;  %v524_v54 = vpop.f32.mrb[3].mxu0 }
 0x16e   :  { %v574_v55 = vpack.c.bf16 %v304_v53, %v303_v52  ;;  %v429_v52 = vpop.permute.xlu0 %428 }
 0x16f   :  { %v229_v56 = vpop.f32.mrb[4].mxu0 }
 0x170   :  { %v527_v57 = vpop.f32.mrb[5].mxu0  ;;  %575 = vmatpush1.bf16.msra.mxu1 %v574_v55  ;;  %v305_v59 = vmax.f32 %v229_v56, 0.0  ;;  %v434_v56 = vpop.permute.xlu1 %433 }
 0x171   :  { %576 = vmatprep.subr.bf16.mxu1 %v604_v10 }
 0x173   :  { %v234_v58 = vpop.f32.mrb[6].mxu0 }
 0x174   :  { %v306_v60 = vmax.f32 %v234_v58, 0.0  ;;  %v530_v61 = vpop.f32.mrb[7].mxu0 }
 0x176   :  { %v577_v62 = vpack.c.bf16 %v306_v60, %v305_v59 }
 0x177   :  { %v239_v63 = vpop.f32.mrb[8].mxu0 }
 0x178   :  { %v533_v0 = vpop.f32.mrb[9].mxu0  ;;  %578 = vmatpush1.bf16.msra.mxu1 %v577_v62  ;;  %v307_v2 = vmax.f32 %v239_v63, 0.0  ;;  %v439_v63 = vpop.permute.xlu0 %438 }
 0x179   :  { %579 = vmatprep.subr.bf16.mxu1 %v604_v10 }
 0x17b   :  { %v244_v1 = vpop.f32.mrb[10].mxu0 }
 0x17c   :  { %v308_v3 = vmax.f32 %v244_v1, 0.0  ;;  %v536_v4 = vpop.f32.mrb[11].mxu0 }
 0x17e   :  { %v580_v5 = vpack.c.bf16 %v308_v3, %v307_v2  ;;  %v460_v2 = vlaneseq }
 0x17f   :  { %v249_v6 = vpop.f32.mrb[12].mxu0 }
 0x180   :  { %v539_v7 = vpop.f32.mrb[13].mxu0  ;;  %581 = vmatpush1.bf16.msra.mxu1 %v580_v5  ;;  %v309_v9 = vmax.f32 %v249_v6, 0.0  ;;  %v461_v5 = vshrl.u32 %v460_v2, 7 }
 0x181   :  { %582 = vmatprep.subr.bf16.mxu1 %v604_v10 }
 0x183   :  { %v254_v8 = vpop.f32.mrb[14].mxu0 }
 0x184   :  { %v310_v11 = vmax.f32 %v254_v8, 0.0  ;;  %v542_v12 = vpop.f32.mrb[15].mxu0  ;;  %v462_v8 = vsub.s32 0, %v461_v5 }
 0x186   :  { %v583_v14 = vpack.c.bf16 %v310_v11, %v309_v9  ;;  %v458_v11 = vpop.permute.xlu1 %457 }
 0x187   :  { %v259_v15 = vpop.f32.mrb[16].mxu0 }
 0x188   :  { %v545_v16 = vpop.f32.mrb[17].mxu0  ;;  %584 = vmatpush1.bf16.msra.mxu1 %v583_v14  ;;  %v311_v18 = vmax.f32 %v259_v15, 0.0  ;;  %v463_v14 = vrot.slane %v458_v11, %v462_v8 }
 0x189   :  { %585 = vmatprep.subr.bf16.mxu1 %v604_v10 }
 0x18b   :  { %v264_v17 = vpop.f32.mrb[18].mxu0 }
 0x18c   :  { %v312_v19 = vmax.f32 %v264_v17, 0.0  ;;  %v548_v20 = vpop.f32.mrb[19].mxu0 }
 0x18e   :  { %v586_v21 = vpack.c.bf16 %v312_v19, %v311_v18 }
 0x18f   :  { %v269_v22 = vpop.f32.mrb[20].mxu0 }
 0x190   :  { %v551_v23 = vpop.f32.mrb[21].mxu0  ;;  %587 = vmatpush1.bf16.msra.mxu1 %v586_v21  ;;  %v313_v25 = vmax.f32 %v269_v22, 0.0 }
 0x191   :  { %588 = vmatprep.subr.bf16.mxu1 %v604_v10 }
 0x193   :  { %v274_v24 = vpop.f32.mrb[22].mxu0 }
 0x194   :  { %v314_v26 = vmax.f32 %v274_v24, 0.0  ;;  %v554_v27 = vpop.f32.mrb[23].mxu0 }
 0x196   :  { %v589_v28 = vpack.c.bf16 %v314_v26, %v313_v25 }
 0x197   :  { %v279_v29 = vpop.f32.mrb[24].mxu0 }
 0x198   :  { %v557_v30 = vpop.f32.mrb[25].mxu0  ;;  %590 = vmatpush1.bf16.msra.mxu1 %v589_v28  ;;  %v315_v32 = vmax.f32 %v279_v29, 0.0 }
 0x199   :  { %591 = vmatprep.subr.bf16.mxu1 %v604_v10 }
 0x19b   :  { %v284_v31 = vpop.f32.mrb[26].mxu0 }
 0x19c   :  { %v316_v33 = vmax.f32 %v284_v31, 0.0  ;;  %v560_v34 = vpop.f32.mrb[27].mxu0 }
 0x19e   :  { %v592_v35 = vpack.c.bf16 %v316_v33, %v315_v32 }
 0x19f   :  { %v289_v36 = vpop.f32.mrb[28].mxu0 }
 0x1a0   :  { %v563_v37 = vpop.f32.mrb[29].mxu0  ;;  %593 = vmatpush1.bf16.msra.mxu1 %v592_v35  ;;  %v317_v39 = vmax.f32 %v289_v36, 0.0 }
 0x1a1   :  { %594 = vmatprep.subr.bf16.mxu1 %v604_v10  ;;  %v323_v10 = vld [vmem:[%s823_s4 + $0x18] sm:$0xff] }
 0x1a3   :  { %v294_v38 = vpop.f32.mrb[30].mxu0 }
 0x1a4   :  { %v318_v40 = vmax.f32 %v294_v38, 0.0  ;;  %v566_v41 = vpop.f32.mrb[31].mxu0 }
 0x1a6   :  { %v595_v42 = vpack.c.bf16 %v318_v40, %v317_v39 }
 0x1a7   :  { %v299_v43 = vpop.f32.mrb[32].mxu0 }
 0x1a8   :  { %v319_v44 = vmax.f32 %v299_v43, 0.0  ;;  %596 = vmatpush1.bf16.msra.mxu1 %v595_v42  ;;  %v569_v45 = vpop.f32.mrb[33].mxu0 }
 0x1a9   :  { %372 = vmatprep.subr.mxu1 %v606_v13  ;;  %v325_v13 = vld [vmem:[%s823_s4 + $0x28] sm:$0xf] }
 0x1ac   :  { %489 = vmatpush1.msk.msra.mxu1 %vm336_vm4, %v319_v44 }
 0x1ad   :  { %405 = vmatmul.mubr.f32.vlgmr.msra.gmra.mrb[0].mxu1 %v320_v46 }
 0x1ae   :  { %491 = vmatprep.mubr.msk.f32.mxu1 %vm326_vm3, %v323_v10 }
 0x1b1   :  { %410 = vmatmul.mubr.f32.gmra.mrb[2].mxu1 %v322_v47 }
 0x1b2   :  { %492 = vmatprep.mubr.msk.f32.mxu1 %vm326_vm3, %v325_v13 }
 0x1b5   :  { %415 = vmatmul.mubr.f32.gmra.mrb[4].mxu1 %v324_v48 }
 0x280   :  { %v406_v49 = vpop.f32.mrb[0].mxu1 }
 0x281   :  { %v408_v50 = vpop.f32.mrb[1].mxu1  ;;  %v420_v51 = vmax.f32 %v406_v49, 0.0 }
 0x283   :  { %v441_v57 = vmul.f32 %v429_v52, %v420_v51 }
 0x284   :  { %v411_v53 = vpop.f32.mrb[2].mxu1 }
 0x285   :  { %v421_v54 = vmax.f32 %v411_v53, 0.0  ;;  %v413_v55 = vpop.f32.mrb[3].mxu1 }
 0x287   :  { %v442_v58 = vmul.f32 %v434_v56, %v421_v54 }
 0x288   :  { %v416_v59 = vpop.f32.mrb[4].mxu1 }
 0x289   :  { %v444_v60 = vadd.f32 %v442_v58, %v441_v57  ;;  %v422_v61 = vmax.f32 %v416_v59, 0.0  ;;  %v418_v62 = vpop.f32.mrb[5].mxu1 }
 0x28b   :  { %v443_v0 = vmul.f32 %v439_v63, %v422_v61 }
 0x28d   :  { %v446_v1 = vsel %vm445_vm5, %v443_v0, 0.0 }
 0x28e   :  { %v447_v3 = vadd.f32 %v446_v1, %v444_v60 }
 0x290   :  { %v448_v4 = vrot.slane %v447_v3, 4 }
 0x292   :  { %v449_v6 = vadd.f32 %v448_v4, %v447_v3 }
 0x294   :  { %v450_v7 = vrot.slane %v449_v6, 2 }
 0x296   :  { %v451_v9 = vadd.f32 %v450_v7, %v449_v6 }
 0x298   :  { %v452_v12 = vrot.slane %v451_v9, 1 }
 0x29a   :  { %v453_v15 = vadd.f32 %v452_v12, %v451_v9 }
 0x29c   :  { %v464_v16 = vadd.f32 %v463_v14, %v453_v15 }
 0x29e   :  { %465 = vst [vmem:[%s824_s7] sm:$0x1] %v464_v16 }

</bundles_post_ra>
